<compile_context>
chip_gen: v6e
topology: v6e:2x2x1
jax: 0.10.0
libtpu: 0.0.40
codegen_flags: <defaults>
</compile_context>

<pallas_src>
import functools

import jax
import jax.numpy as jnp
from jax.experimental import pallas as pl
from jax.experimental.pallas import tpu as pltpu

_EPS = 1e-5
_LEAKY_SLOPE = 0.2
_MIB = 1024 * 1024


def _round_up(x, m):
    return ((x + m - 1) // m) * m


def _vmem_limit(nbytes):
    # Request what the pass actually needs (+25% / +4 MiB headroom), clipped to
    # [32 MiB, 48 MiB]: safe on v7x (64 MiB physical) and well under v5e/v6e.
    want = int(nbytes * 1.25) + 4 * _MIB
    return int(min(max(want, 32 * _MIB), 48 * _MIB))


def _conv_stats_kernel(p_ref, w_ref, conv_ref, sum_ref, sumsq_ref, acc_ref, *, tk):
    """Pass 1: K-chunked bf16 MXU matmul into an f32 VMEM accumulator.

    The weight is a single VMEM-resident (Kp, Cpad) block (constant index_map),
    sliced per K step in-kernel.  On the last K step the conv intermediate is
    written back once in bf16 together with per-channel sum / sum-of-squares
    (taken from the f32 accumulator, so BN statistics stay f32-exact).
    """
    ki = pl.program_id(1)

    @pl.when(ki == 0)
    def _():
        acc_ref[...] = jnp.zeros_like(acc_ref)

    k0 = pl.multiple_of(ki * tk, 128)
    acc_ref[...] += jnp.dot(p_ref[...], w_ref[pl.ds(k0, tk), :],
                            preferred_element_type=jnp.float32)

    @pl.when(ki == pl.num_programs(1) - 1)
    def _():
        acc = acc_ref[...]
        conv_ref[...] = acc.astype(conv_ref.dtype)                 # bf16 intermediate
        sum_ref[...] = jnp.sum(acc, axis=0, keepdims=True)         # (1, Cpad)
        sumsq_ref[...] = jnp.sum(acc * acc, axis=0, keepdims=True)  # (1, Cpad)


def _bn_act_kernel(conv_ref, ss_ref, o_ref, *, act, cout):
    """Pass 2: y = conv * scale + shift (BN folded), activation, Cout-wide store."""
    y = conv_ref[...].astype(jnp.float32) * ss_ref[0:1, :] + ss_ref[1:2, :]
    if act == "relu":
        y = jnp.maximum(y, 0.0)
    else:  # LeakyReLU(0.2)
        y = jnp.where(y >= 0.0, y, _LEAKY_SLOPE * y)
    o_ref[...] = y[:, :cout].astype(o_ref.dtype)


def unet_block_down(x_nchw, weight, bias, gamma, beta, *, act="relu"):
    """Conv2d(Cin,Cout,4,stride=2,pad=1,reflect) -> BatchNorm2d(train) -> act."""
    # Conv bias is accepted for API parity but unused: a per-channel conv bias
    # is cancelled exactly by the mean subtraction of training-mode BatchNorm.
    del bias
    N, Cin, H, W = x_nchw.shape
    assert H % 2 == 0 and W % 2 == 0, "Conv2d(k=4, s=2, p=1) expects even H, W"
    Cout = weight.shape[0]
    Ho, Wo = H // 2, W // 2
    M = N * Ho * Wo
    K = 16 * Cin

    # ---- tiling ----
    Cpad = _round_up(Cout, 128)
    # M tiles: <= 512 rows, and at least two tiles whenever M >= 16 so the
    # "parallel" M axis feeds both TensorCores on v7x.
    if M >= 1024:
        tm = 512
    elif M >= 16:
        tm = _round_up(-(-M // 2), 16)
    else:
        tm = _round_up(max(M, 1), 16)
    Mpad = _round_up(M, tm)
    num_m = Mpad // tm

    # K padded only to 128; tk = largest 128-multiple divisor of Kp up to 2048.
    Kp = _round_up(K, 128)
    max_tk = 2048
    if Kp <= max_tk:
        tk = Kp
    else:
        q = Kp // 128
        d = max(dd for dd in range(1, q + 1) if q % dd == 0 and 128 * dd <= max_tk)
        tk = 128 * d
    num_k = Kp // tk

    # Pass-2 tile: bigger slabs (pure HBM stream), still >= 2 tiles when possible.
    best_d = 1
    for d in range(1, num_m + 1):
        if num_m % d == 0 and tm * d <= 2048 and (num_m // d >= 2 or num_m == 1):
            best_d = d
    tm2 = tm * best_d
    num_m2 = num_m // best_d

    # ---- glue: NCHW -> NHWC, reflect pad, im2col (bf16 halves input traffic) ----
    x = jnp.transpose(x_nchw, (0, 2, 3, 1)).astype(jnp.bfloat16)
    xp = jnp.pad(x, ((0, 0), (1, 1), (1, 1), (0, 0)), mode="reflect")
    cols = []
    for kh in range(4):
        for kw in range(4):
            cols.append(xp[:, kh:kh + 2 * Ho:2, kw:kw + 2 * Wo:2, :])
    patches = jnp.stack(cols, axis=3).reshape(M, K)                  # (M, K) bf16
    patches = jnp.pad(patches, ((0, Mpad - M), (0, Kp - K)))

    # PyTorch conv weight (Cout, Cin, kh, kw) -> (kh, kw, Cin, Cout) -> (K, Cout)
    wmat = jnp.transpose(weight, (2, 3, 1, 0)).reshape(K, Cout).astype(jnp.bfloat16)
    wmat = jnp.pad(wmat, ((0, Kp - K), (0, Cpad - Cout)))

    # ---- pass 1: tiled conv matmul (resident weight) + per-tile channel stats ----
    bytes_p1 = (2 * tm * tk * 2          # patches (double-buffered, bf16)
                + 2 * Kp * Cpad * 2      # resident weight (budget 2 buffers)
                + 2 * tm * Cpad * 2      # bf16 conv output block
                + tm * Cpad * 4          # f32 accumulator scratch
                + 4 * 8 * Cpad * 4)      # sum / sumsq blocks
    conv, psum, psumsq = pl.pallas_call(
        functools.partial(_conv_stats_kernel, tk=tk),
        out_shape=(
            jax.ShapeDtypeStruct((Mpad, Cpad), jnp.bfloat16),
            jax.ShapeDtypeStruct((num_m, 1, Cpad), jnp.float32),
            jax.ShapeDtypeStruct((num_m, 1, Cpad), jnp.float32),
        ),
        grid=(num_m, num_k),
        in_specs=[
            pl.BlockSpec((tm, tk), lambda mi, ki: (mi, ki)),
            pl.BlockSpec((Kp, Cpad), lambda mi, ki: (0, 0)),   # VMEM-resident weight
        ],
        out_specs=(
            pl.BlockSpec((tm, Cpad), lambda mi, ki: (mi, 0)),
            pl.BlockSpec((None, 1, Cpad), lambda mi, ki: (mi, 0, 0)),
            pl.BlockSpec((None, 1, Cpad), lambda mi, ki: (mi, 0, 0)),
        ),
        scratch_shapes=[pltpu.VMEM((tm, Cpad), jnp.float32)],
        compiler_params=pltpu.CompilerParams(
            dimension_semantics=("parallel", "arbitrary"),
            vmem_limit_bytes=_vmem_limit(bytes_p1)),
    )(patches, wmat)

    # ---- BN statistics (tiny, per-channel, f32) and folded scale/shift ----
    total = jnp.sum(psum, axis=(0, 1))                  # (Cpad,)
    total_sq = jnp.sum(psumsq, axis=(0, 1))             # (Cpad,)
    mean = total / M                                    # padded rows are zero
    var = jnp.maximum(total_sq / M - mean * mean, 0.0)  # biased variance (BN train)
    gamma_p = jnp.pad(gamma.astype(jnp.float32), (0, Cpad - Cout))
    beta_p = jnp.pad(beta.astype(jnp.float32), (0, Cpad - Cout))
    scale = gamma_p * jax.lax.rsqrt(var + _EPS)
    shift = beta_p - mean * scale
    ss = jnp.zeros((8, Cpad), jnp.float32).at[0].set(scale).at[1].set(shift)

    # ---- pass 2: normalize + activation, Cout-wide (unpadded) output ----
    bytes_p2 = (2 * tm2 * Cpad * 2       # bf16 conv input blocks
                + 2 * tm2 * Cout * 4     # f32 output blocks
                + 2 * 8 * Cpad * 4)      # scale/shift
    out_flat = pl.pallas_call(
        functools.partial(_bn_act_kernel, act=act, cout=Cout),
        out_shape=jax.ShapeDtypeStruct((Mpad, Cout), jnp.float32),
        grid=(num_m2,),
        in_specs=[
            pl.BlockSpec((tm2, Cpad), lambda mi: (mi, 0)),
            pl.BlockSpec((8, Cpad), lambda mi: (0, 0)),
        ],
        out_specs=pl.BlockSpec((tm2, Cout), lambda mi: (mi, 0)),
        compiler_params=pltpu.CompilerParams(
            dimension_semantics=("parallel",),
            vmem_limit_bytes=_vmem_limit(bytes_p2)),
    )(conv, ss)

    out = out_flat[:M].reshape(N, Ho, Wo, Cout)
    return jnp.transpose(out, (0, 3, 1, 2))  # back to NCHW (module-output parity)


def _reference(x_nchw, weight, bias, gamma, beta, *, act="relu"):
    """Pure-JAX reference (bf16 operands like the kernel, f32 conv intermediate).

    The kernel additionally stores the conv intermediate in bf16 (a bandwidth
    optimization), so comparisons use a bf16-level tolerance.  The conv bias is
    dropped here too: it cancels exactly under training-mode BatchNorm.
    """
    del bias
    x = jnp.transpose(x_nchw, (0, 2, 3, 1)).astype(jnp.bfloat16).astype(jnp.float32)
    xp = jnp.pad(x, ((0, 0), (1, 1), (1, 1), (0, 0)), mode="reflect")
    w = jnp.transpose(weight, (2, 3, 1, 0)).astype(jnp.bfloat16).astype(jnp.float32)
    y = jax.lax.conv_general_dilated(
        xp, w, window_strides=(2, 2), padding="VALID",
        dimension_numbers=("NHWC", "HWIO", "NHWC"))
    mean = jnp.mean(y, axis=(0, 1, 2), keepdims=True)
    var = jnp.mean((y - mean) ** 2, axis=(0, 1, 2), keepdims=True)
    y = (y - mean) * jax.lax.rsqrt(var + _EPS) * gamma.reshape(1, 1, 1, -1) \
        + beta.reshape(1, 1, 1, -1)
    y = jnp.maximum(y, 0.0) if act == "relu" else jnp.where(y >= 0.0, y, _LEAKY_SLOPE * y)
    return jnp.transpose(y, (0, 3, 1, 2))


def _run_case(key, N, Cin, Cout, H, W, act):
    k_x, k_w, k_b, k_g, k_bt = jax.random.split(key, 5)
    x = jax.random.normal(k_x, (N, Cin, H, W), dtype=jnp.float32)
    weight = 0.1 * jax.random.normal(k_w, (Cout, Cin, 4, 4), dtype=jnp.float32)
    bias = 0.1 * jax.random.normal(k_b, (Cout,), dtype=jnp.float32)
    gamma = 1.0 + 0.1 * jax.random.normal(k_g, (Cout,), dtype=jnp.float32)
    beta = 0.1 * jax.random.normal(k_bt, (Cout,), dtype=jnp.float32)

    out = jax.block_until_ready(unet_block_down(x, weight, bias, gamma, beta, act=act))
    ref = _reference(x, weight, bias, gamma, beta, act=act)
    # bf16 conv intermediate (kernel) vs f32 intermediate (reference): bf16-level tol.
    if not jnp.allclose(out, ref, atol=2e-2, rtol=2e-2):
        err = float(jnp.max(jnp.abs(out - ref)))
        raise AssertionError(f"Pallas UNetBlock mismatch (act={act}), max err {err}")


if __name__ == "__main__":
    key = jax.random.PRNGKey(0)
    k1, k2 = jax.random.split(key)

    # Primary config: matches the module at small shapes (N=2, Cin=4, H=W=16),
    # two M tiles (exercises the cross-tile BN-statistics reduction).
    _run_case(k1, N=2, Cin=4, Cout=8, H=16, W=16, act="relu")
    # Secondary config: Kp=2560 -> two K grid steps (exercises the resident-weight
    # in-kernel slicing + f32 accumulator path) and the LeakyReLU branch.
    _run_case(k2, N=2, Cin=160, Cout=16, H=16, W=16, act="leaky")

    print("KERNEL_OK")
</pallas_src>

<mosaic_0001>
module attributes {stable_mosaic.version = 11 : i64} {
  func.func @_conv_stats_kernel(%arg0: i32, %arg1: i32, %arg2: memref<64x128xbf16, #tpu.memory_space<vmem>>, %arg3: memref<128x128xbf16, #tpu.memory_space<vmem>>, %arg4: memref<64x128xbf16, #tpu.memory_space<vmem>>, %arg5: memref<1x1x128xf32, #tpu.memory_space<vmem>>, %arg6: memref<1x1x128xf32, #tpu.memory_space<vmem>>, %arg7: memref<64x128xf32, #tpu.memory_space<vmem>>) attributes {dimension_semantics = [#tpu.dimension_semantics<parallel>, #tpu.dimension_semantics<arbitrary>], iteration_bounds = array<i64: 2, 1>, scalar_prefetch = 0 : i64, scratch_operands = 1 : i64, tpu.core_type = #tpu.core_type<tc>, window_params = [{transform_indices = @transform_0, window_bounds = array<i64: 64, 128>}, {pipeline_mode = #tpu.pipeline_mode<synchronous>, transform_indices = @transform_1, window_bounds = array<i64: 128, 128>}, {transform_indices = @transform_2, window_bounds = array<i64: 64, 128>}, {transform_indices = @transform_3, window_bounds = array<i64: 1, 1, 128>}, {transform_indices = @transform_4, window_bounds = array<i64: 1, 1, 128>}]} {
    %c0_i32 = arith.constant 0 : i32
    %0 = arith.cmpi eq, %arg1, %c0_i32 : i32
    %1 = arith.extui %0 : i1 to i32
    %c0_i32_0 = arith.constant 0 : i32
    %2 = arith.cmpi ne, %1, %c0_i32_0 : i32
    scf.if %2 {
      %cst_9 = arith.constant 0.000000e+00 : f32
      %15 = vector.broadcast %cst_9 : f32 to vector<64x128xf32>
      %c0_10 = arith.constant 0 : index
      %c0_11 = arith.constant 0 : index
      %16 = vector.load %arg7[%c0_10, %c0_11] : memref<64x128xf32, #tpu.memory_space<vmem>>, vector<64x128xf32>
      tpu.vector_store %arg7[%c0_10, %c0_11], %15 {strides = array<i32>} : memref<64x128xf32, #tpu.memory_space<vmem>>, vector<64x128xf32>,
    } else {
    }
    %c128_i32 = arith.constant 128 : i32
    %3 = arith.muli %arg1, %c128_i32 : i32
    %4 = tpu.assume_multiple %3, 128 : i32
    %c0 = arith.constant 0 : index
    %c0_1 = arith.constant 0 : index
    %5 = vector.load %arg7[%c0, %c0_1] : memref<64x128xf32, #tpu.memory_space<vmem>>, vector<64x128xf32>
    %c0_2 = arith.constant 0 : index
    %c0_3 = arith.constant 0 : index
    %6 = vector.load %arg2[%c0_2, %c0_3] : memref<64x128xbf16, #tpu.memory_space<vmem>>, vector<64x128xbf16>
    %7 = arith.index_cast %4 : i32 to index
    %c0_4 = arith.constant 0 : index
    %8 = vector.load %arg3[%7, %c0_4] : memref<128x128xbf16, #tpu.memory_space<vmem>>, vector<128x128xbf16>
    %cst = arith.constant dense<0.000000e+00> : vector<64x128xf32>
    %9 = tpu.matmul %6, %8, %cst {dimension_numbers = #tpu.dot_dimension_numbers<[1], [0], [0], [1], [0, 0, 1, 1], [], []>} : vector<64x128xbf16>, vector<128x128xbf16>, vector<64x128xf32> -> vector<64x128xf32>
    %10 = arith.addf %5, %9 : vector<64x128xf32>
    %c0_5 = arith.constant 0 : index
    %c0_6 = arith.constant 0 : index
    %11 = vector.load %arg7[%c0_5, %c0_6] : memref<64x128xf32, #tpu.memory_space<vmem>>, vector<64x128xf32>
    tpu.vector_store %arg7[%c0_5, %c0_6], %10 {strides = array<i32>} : memref<64x128xf32, #tpu.memory_space<vmem>>, vector<64x128xf32>,
    %c0_i32_7 = arith.constant 0 : i32
    %12 = arith.cmpi eq, %arg1, %c0_i32_7 : i32
    %13 = arith.extui %12 : i1 to i32
    %c0_i32_8 = arith.constant 0 : i32
    %14 = arith.cmpi ne, %13, %c0_i32_8 : i32
    scf.if %14 {
      %c0_9 = arith.constant 0 : index
      %c0_10 = arith.constant 0 : index
      %15 = vector.load %arg7[%c0_9, %c0_10] : memref<64x128xf32, #tpu.memory_space<vmem>>, vector<64x128xf32>
      %16 = arith.truncf %15 : vector<64x128xf32> to vector<64x128xbf16>
      %c0_11 = arith.constant 0 : index
      %c0_12 = arith.constant 0 : index
      %17 = vector.load %arg4[%c0_11, %c0_12] : memref<64x128xbf16, #tpu.memory_space<vmem>>, vector<64x128xbf16>
      tpu.vector_store %arg4[%c0_11, %c0_12], %16 {strides = array<i32>} : memref<64x128xbf16, #tpu.memory_space<vmem>>, vector<64x128xbf16>,
      %cst_13 = arith.constant dense<0.000000e+00> : vector<128xf32>
      %18 = vector.multi_reduction <add>, %15, %cst_13 [0] : vector<64x128xf32> to vector<128xf32>
      %19 = vector.shape_cast %18 : vector<128xf32> to vector<1x128xf32>
      %c0_14 = arith.constant 0 : index
      %c0_15 = arith.constant 0 : index
      %c0_16 = arith.constant 0 : index
      %20 = vector.load %arg5[%c0_14, %c0_15, %c0_16] : memref<1x1x128xf32, #tpu.memory_space<vmem>>, vector<1x1x128xf32>
      %21 = vector.shape_cast %20 : vector<1x1x128xf32> to vector<1x128xf32>
      %22 = vector.shape_cast %19 : vector<1x128xf32> to vector<1x1x128xf32>
      tpu.vector_store %arg5[%c0_14, %c0_15, %c0_16], %22 {strides = array<i32>} : memref<1x1x128xf32, #tpu.memory_space<vmem>>, vector<1x1x128xf32>,
      %23 = arith.mulf %15, %15 : vector<64x128xf32>
      %cst_17 = arith.constant dense<0.000000e+00> : vector<128xf32>
      %24 = vector.multi_reduction <add>, %23, %cst_17 [0] : vector<64x128xf32> to vector<128xf32>
      %25 = vector.shape_cast %24 : vector<128xf32> to vector<1x128xf32>
      %c0_18 = arith.constant 0 : index
      %c0_19 = arith.constant 0 : index
      %c0_20 = arith.constant 0 : index
      %26 = vector.load %arg6[%c0_18, %c0_19, %c0_20] : memref<1x1x128xf32, #tpu.memory_space<vmem>>, vector<1x1x128xf32>
      %27 = vector.shape_cast %26 : vector<1x1x128xf32> to vector<1x128xf32>
      %28 = vector.shape_cast %25 : vector<1x128xf32> to vector<1x1x128xf32>
      tpu.vector_store %arg6[%c0_18, %c0_19, %c0_20], %28 {strides = array<i32>} : memref<1x1x128xf32, #tpu.memory_space<vmem>>, vector<1x1x128xf32>,
    } else {
    }
    return
  }
  func.func @transform_0(%arg0: i32, %arg1: i32) -> (i32, i32) {
    %c0_i32 = arith.constant 0 : i32
    return %arg0, %arg1 : i32, i32
  }
  func.func @transform_1(%arg0: i32, %arg1: i32) -> (i32, i32) {
    %c0_i32 = arith.constant 0 : i32
    %c0_i32_0 = arith.constant 0 : i32
    %c0_i32_1 = arith.constant 0 : i32
    return %c0_i32, %c0_i32_0 : i32, i32
  }
  func.func @transform_2(%arg0: i32, %arg1: i32) -> (i32, i32) {
    %c0_i32 = arith.constant 0 : i32
    %c0_i32_0 = arith.constant 0 : i32
    return %arg0, %c0_i32 : i32, i32
  }
  func.func @transform_3(%arg0: i32, %arg1: i32) -> (i32, i32, i32) {
    %c0_i32 = arith.constant 0 : i32
    %c0_i32_0 = arith.constant 0 : i32
    %c0_i32_1 = arith.constant 0 : i32
    return %arg0, %c0_i32, %c0_i32_0 : i32, i32, i32
  }
  func.func @transform_4(%arg0: i32, %arg1: i32) -> (i32, i32, i32) {
    %c0_i32 = arith.constant 0 : i32
    %c0_i32_0 = arith.constant 0 : i32
    %c0_i32_1 = arith.constant 0 : i32
    return %arg0, %c0_i32, %c0_i32_0 : i32, i32, i32
  }
}

</mosaic_0001>

<bundles_post_ra>
// kernel: tpu_custom_call.1
= control target key start
LH: loop header
LB: loop body
LE: loop exit
PB: predicated region body
PF: predicated region fallthrough
CT: control target
= control target key end

     0   :  { %s1472_s0 = inlined_call_operand.hbm [shape: bf16[128,128], index: 0, kind: input, shape index: {}]   ;;  %s1473_s1 = inlined_call_operand.hbm [shape: bf16[128,128], index: 1, kind: input, shape index: {}]   ;;  %s1474_s2 = inlined_call_operand.hbm [shape: bf16[128,128], index: 2, kind: output, shape index: {0}]   ;;  %s1475_s3 = inlined_call_operand.hbm [shape: f32[2,1,128], index: 3, kind: output, shape index: {1}]   ;;  %s1476_s4 = inlined_call_operand.hbm [shape: f32[2,1,128], index: 4, kind: output, shape index: {2}]  }
   0x1   :  { %1481 = sst [smem:[#allocation16_spill]] %s1473_s1 }
   0x2   :  { %10 = vsyncpa [#allocation4], 0 }
   0x3   :  { %12 = vsyncpa [#allocation4 + $0x1], 0 }
   0x4   :  { %13 = vsyncpa [#allocation7], 0 }
   0x5   :  { %14 = vsyncpa [#allocation5], 0 }
   0x6   :  { %16 = vsyncpa [#allocation5 + $0x1], 0 }
   0x7   :  { %17 = vsyncpa [#allocation10], 0 }
   0x8   :  { %19 = vsyncpa [#allocation10 + $0x1], 0  ;;  %s1203_s15 = smov 0   ;;  %s1205_s16 = smov 0  }
   0x9   :  { %s1207_s17 = smov 0   ;;  %s1209_s18 = smov 0  }
   0xa   :  { %s1211_s19 = smov 0   ;;  %s1213_s20 = smov 0  }
   0xb LB: > { %s1234_s21 = sadd.s32 4294967295, %s1167_s20   ;;  %s1477_s22 = sadd.s32 4294967294, %s1167_s20   ;;  %s1167_s20 = sphi %s1213_s20, %s25_s20   ;;  %s1163_s19 = sphi %s1211_s19, %s1502_s19   ;;  %s1159_s18 = sphi %s1209_s18, %s1501_s18   ;;  %s1155_s17 = sphi %s1207_s17, %s1500_s17   ;;  %s1151_s16 = sphi %s1205_s16, %s1499_s16   ;;  %s1147_s15 = sphi %s1203_s15, %s1498_s15  }
   0xc   : > { %p59_p0 = scmp.ne.s32.totalorder %s1151_s16, %s1147_s15  ;;  %p1480_p1 = scmp.eq.s32.totalorder %s1234_s21, 0 }
   0xd   : > { %p110_p3 = scmp.eq.s32.totalorder %s1477_s22, 1  ;;  %p752_p5 = scmp.ge.s32.totalorder %s1167_s20, 1 }
   0xe   : > { %p1245_p4 = por %p1480_p1, %p59_p0  ;;  %p169_p7 = scmp.lt.s32.totalorder %s1167_s20, 3 }
   0xf   : > { %p1250_p6 = por %p110_p3, %p59_p0  ;;  %s1169_s26 = smov [#allocation6]  }
  0x10   : > { %p1255_p8 = pnand %p752_p5, %p169_p7  ;;  %s181_s27 = sshll.u32 %s1169_s26, 4  ;;  %s182_s27 = int_to_ptr.vmem [resolvable:$true] %s181_s27 }
  0x11   : > { %s1483_s24 = scalar_select %p1250_p6, 1, 0 }
  0x12   : > { %p886_p9 = pneg %p1255_p8  ;;  %s37_s29 = sadd.s32 1, %s1163_s19 }
  0x13   : > { %s984_s30 = scalar_lea.vmem %s182_s27, 1024  ;;  %p992_p5 = scmp.lt.s32.totalorder %s182_s27, %s182_s27 }
  0x14   : > { %p1264_p11 = pnand %p886_p9, %p1480_p1  ;;  %p985_p13 = scmp.ne.s32.totalorder %s182_s27, %s984_s30 }
  0x15   : > { %p993_p7 = scmp.lt.s32.totalorder %s984_s30, %s984_s30 }
  0x16   : > { %p975_p12 = pneg %p1264_p11 }
  0x17   : > { %p994_p2 = por %p993_p7, %p992_p5 }
  0x18   : > { %p987_p0 = pnand %p985_p13, %p975_p12 }
  0x1a   : > { %p988_p3 = pneg %p987_p0 }
  0x1c   : > { %p995_p6 = pnand %p994_p2, %p988_p3 }
  0x1e   : > { %998 = shalt.err (!%p995_p6)
}
  0x1f   : > { %s1478_s5 = smov 64   ;;  %s1479_s6 = smov 4  }
  0x20   : > { %s1486_s1 = sld [smem:[#allocation16_spill]]  ;;  %p39_p2 = scmp.ge.s32.totalorder %s37_s29, 2 }
  0x21   : > { %s46_s9 = sadd.s32 1, %s1155_s17  ;;  %p53_p6 = scmp.ne.s32.totalorder %s1155_s17, %s1151_s16 }
  0x22   : > { %p54_p9 = scmp.eq.s32.totalorder %s1167_s20, 0  ;;  %s1504_s29 = smov (%p39_p2, %s37_s29), 0 }
  0x23   : > { %p1488_p13 = scmp.eq.s32.totalorder %s1234_s21, 1  ;;  %s41_s12 = ssub.s32 %s1163_s19, %s1504_s29 }
  0x24   : > { %p1285_p12 = por %p54_p9, %p53_p6  ;;  %p905_p3 = scmp.lt.s32.totalorder %s1167_s20, 2 }
  0x25   : > { %p1291_p0 = por %p1488_p13, %p53_p6  ;;  %s195_s13 = sand.u32 1, %s1155_s17  }
  0x26   : > { %889 = dma.hbm_to_vmem [thread:$0]  (!%p1264_p11), %s1486_s1, 1024, %s182_s27, [#allocation7], %s1478_s5, %s1478_s5, %s1479_s6  }
  0x27   : > { %p44_p11 = scmp.eq.s32.totalorder %s41_s12, 0  ;;  %s755_s14 = sshll.u32 %s195_s13, 5 }
  0x28   : > { %s789_s27 = sshll.u32 %s1163_s19, 9  ;;  %s199_s8 = scalar_lea.vmem [#allocation3], %s755_s14 }
  0x29   : > { %s1300_s26 = scalar_select %p44_p11, %s1155_s17, %s46_s9  }
  0x2a   : > { %s206_s7 = scalar_lea.hbm %s1472_s0, %s789_s27  ;;  %s207_s22 = sshll.u32 %s199_s8, 4  ;;  %s208_s22 = int_to_ptr.vmem [resolvable:$true] %s207_s22 }
  0x2b   : > { %p1308_p5 = pnand %p905_p3, %p1285_p12  ;;  %s196_s6 = scalar_lea.sflag [#allocation4], %s195_s13 }
  0x2c   : > { %s1012_s12 = scalar_lea.vmem %s208_s22, 512  ;;  %s1172_s9 = smov [#allocation3]  }
  0x2d   : > { %p1001_p7 = pneg %p1308_p5  ;;  %p1013_p2 = scmp.ne.s32.totalorder %s208_s22, %s1012_s12 }
  0x2e   : > { %s1017_s1 = sshll.u32 %s1172_s9, 4  ;;  %s1018_s1 = int_to_ptr.vmem [resolvable:$false] %s1017_s1 }
  0x2f   : > { %p1015_p6 = pnand %p1013_p2, %p1001_p7  ;;  %s1019_s27 = scalar_lea.vmem %s1018_s1, 1024 }
  0x30   : > { %p1020_p13 = scmp.lt.s32.totalorder %s208_s22, %s1018_s1  ;;  %p1021_p11 = scmp.lt.s32.totalorder %s1019_s27, %s1012_s12 }
  0x31   : > { %p1016_p9 = pneg %p1015_p6 }
  0x32   : > { %p1022_p10 = por %p1021_p11, %p1020_p13 }
  0x34   : > { %p1023_p1 = pnand %p1022_p10, %p1016_p9 }
  0x36   : > { %1026 = shalt.err (!%p1023_p1)
}
  0x37   : > { %s1491_s10 = smov 4   ;;  %s1492_s14 = smov 64  }
  0x38   : > { %893 = dma.hbm_to_vmem [thread:$0]  (!%p1308_p5), %s206_s7, 512, %s208_s22, %s196_s6, %s1492_s14, %s1492_s14, %s1491_s10  }
  0x39   : > { %219 = sbr.rel (%p1255_p8) target bundleno = 369 (0x171), region = 28  ;;  %s1322_s13 = sand.u32 (!%p1255_p8), 1, %s1151_s16  }
  0x3a   : > { %s759_s1 = sshll.u32 (!%p1255_p8), %s1322_s13, 5  ;;  %s222_s28 = scalar_lea.sflag (!%p1255_p8), [#allocation4], %s1322_s13 }
  0x3b   : > { %s1328_s30 = scalar_lea.vmem (!%p1255_p8), [#allocation3], %s759_s1 }
  0x3e   : > { %1130 = dma.done.wait (%p1245_p4), %s222_s28, 512  }
  0x3f   : > { %1132 = vsyncadd (%p1245_p4), %s222_s28, 4294966784  ;;  %p1493_p1 = scmp.eq.s32.totalorder %s1234_s21, 0 }
  0x41   : > { %1134 = dma.done.wait (%p1493_p1), [#allocation7], 1024   ;;  %p1494_p8 = pmov %p1493_p1 }
  0x42   : > { %v961_v0 = vld [vmem:[#allocation6 + $0x38] sm:$0xff]   ;;  %v962_v1 = vld [vmem:[#allocation6 + $0x30] sm:$0xff]   ;;  %v963_v2 = vld [vmem:[#allocation6 + $0x28] sm:$0xff]   ;;  %s249_s22 = scalar_lea.vmem [#allocation8], %s759_s1  ;;  %s798_s25 = sshll.u32 %s1159_s18, 9 }
  0x43   : > { %1136 = vsyncadd (%p1494_p8), [#allocation7], 4294966272  ;;  %834 = vmatprep.subr.bf16.mxu0 %v961_v0  ;;  %858 = vmatprep.subr.bf16.mxu1 %v961_v0  ;;  %v964_v3 = vld [vmem:[#allocation6 + $0x20] sm:$0xff]   ;;  %v971_v5 = vld [vmem:[%s1328_s30 + $0x10] sm:$0xff]   ;;  %s576_s23 = sshll.u32 %s249_s22, 4  ;;  %s1353_s7 = scalar_lea.hbm %s1474_s2, %s798_s25  ;;  %s1347_s23 = int_to_ptr.vmem [resolvable:$true] %s576_s23 }
  0x44   : > { %835 = vmatpush3.bf16.msra.mxu0 %v961_v0  ;;  %866 = vmatpush3.bf16.msra.mxu1 %v961_v0  ;;  %v969_v4 = vld [vmem:[%s1328_s30] sm:$0xff]   ;;  %v965_v6 = vld [vmem:[#allocation6 + $0x18] sm:$0xff]   ;;  %v966_v7 = vld [vmem:[#allocation6 + $0x10] sm:$0xff]   ;;  %s555_s8 = scalar_lea.sflag [#allocation5], %s1322_s13  ;;  %s1027_s12 = scalar_lea.vmem %s1347_s23, 512 }
  0x45   : > { %836 = vmatprep.subr.bf16.mxu0 %v962_v1  ;;  %859 = vmatprep.subr.bf16.mxu1 %v962_v1  ;;  %v967_v8 = vld [vmem:[#allocation6 + $0x8] sm:$0xff]   ;;  %v968_v9 = vld [vmem:[#allocation6] sm:$0xff]   ;;  %v972_v11 = vld [vmem:[%s1328_s30 + $0x18] sm:$0xff]   ;;  %p1028_p4 = scmp.ne.s32.totalorder %s1347_s23, %s1027_s12  ;;  %s1173_s9 = smov [#allocation8]  }
  0x46   : > { %850 = vmatprep.mubr.bf16.mxu0 %v969_v4  ;;  %854 = vmatprep.mubr.bf16.mxu1 %v971_v5  ;;  %v970_v10 = vld [vmem:[%s1328_s30 + $0x8] sm:$0xff]   ;;  %s1031_s27 = sshll.u32 %s1173_s9, 4  ;;  %s1032_s27 = int_to_ptr.vmem [resolvable:$false] %s1031_s27 }
  0x47   : > { %p1029_p10 = pnand %p1028_p4, %p1291_p0  ;;  %s1033_s10 = scalar_lea.vmem %s1032_s27, 1024 }
  0x48   : > { %837 = vmatpush3.bf16.msra.mxu0 %v962_v1  ;;  %867 = vmatpush3.bf16.msra.mxu1 %v962_v1  ;;  %p1034_p3 = scmp.lt.s32.totalorder %s1347_s23, %s1032_s27  ;;  %p1035_p5 = scmp.lt.s32.totalorder %s1033_s10, %s1027_s12 }
  0x49   : > { %838 = vmatprep.subr.bf16.mxu0 %v963_v2  ;;  %860 = vmatprep.subr.bf16.mxu1 %v963_v2  ;;  %p1030_p12 = pneg %p1029_p10 }
  0x4a   : > { %p1036_p7 = por %p1035_p5, %p1034_p3 }
  0x4c   : > { %839 = vmatpush3.bf16.msra.mxu0 %v963_v2  ;;  %868 = vmatpush3.bf16.msra.mxu1 %v963_v2  ;;  %p1037_p2 = pnand %p1036_p7, %p1030_p12 }
  0x4d   : > { %840 = vmatprep.subr.bf16.mxu0 %v964_v3  ;;  %861 = vmatprep.subr.bf16.mxu1 %v964_v3 }
  0x50   : > { %841 = vmatpush3.bf16.msra.mxu0 %v964_v3  ;;  %869 = vmatpush3.bf16.msra.mxu1 %v964_v3 }
  0x51   : > { %842 = vmatprep.subr.bf16.mxu0 %v965_v6  ;;  %862 = vmatprep.subr.bf16.mxu1 %v965_v6 }
  0x54   : > { %843 = vmatpush3.bf16.msra.mxu0 %v965_v6  ;;  %870 = vmatpush3.bf16.msra.mxu1 %v965_v6 }
  0x55   : > { %844 = vmatprep.subr.bf16.mxu0 %v966_v7  ;;  %863 = vmatprep.subr.bf16.mxu1 %v966_v7 }
  0x58   : > { %845 = vmatpush3.bf16.msra.mxu0 %v966_v7  ;;  %871 = vmatpush3.bf16.msra.mxu1 %v966_v7 }
  0x59   : > { %846 = vmatprep.subr.bf16.mxu0 %v967_v8  ;;  %864 = vmatprep.subr.bf16.mxu1 %v967_v8 }
  0x5c   : > { %847 = vmatpush3.bf16.msra.mxu0 %v967_v8  ;;  %872 = vmatpush3.bf16.msra.mxu1 %v967_v8 }
  0x5d   : > { %848 = vmatprep.subr.bf16.mxu0 %v968_v9  ;;  %865 = vmatprep.subr.bf16.mxu1 %v968_v9 }
  0x60   : > { %849 = vmatpush3.bf16.msra.mxu0 %v968_v9  ;;  %873 = vmatpush3.bf16.msra.mxu1 %v968_v9 }
  0x63   : > { %851 = vmatmul.mubr.bf16.vlgmr.msra.gmra.mxu0 %v970_v10  ;;  %855 = vmatmul.mubr.bf16.vlgmr.msra.gmra.mxu1 %v972_v11 }
 0x123   : > { %v852_v12 = vpop.f32.mrf.mxu0  ;;  %v1342_v13 = vpop.f32.mrf.mxu1 }
 0x124   : > { %v534_v27 = vmul.f32 %v852_v12, %v852_v12 }
 0x125   : > { %v420_v14 = vpop.f32.mrf.mxu0  ;;  %v436_v15 = vpop.f32.mrf.mxu1 }
 0x126   : > { %v532_v20 = vmul.f32 %v420_v14, %v420_v14 }
 0x127   : > { %v853_v16 = vpop.f32.mrf.mxu0  ;;  %v857_v17 = vpop.f32.mrf.mxu1 }
 0x128   : > { %v807_v18 = vpack.c.bf16 %v853_v16, %v852_v12  ;;  %v817_v19 = vpack.c.bf16 %v857_v17, %v1342_v13 }
 0x129   : > { %v423_v21 = vpop.f32.mrf.mxu0  ;;  %v439_v22 = vpop.f32.mrf.mxu1 }
 0x12a   : > { %819 = vst [vmem:[%s249_s22 + $0x8] sm:$0xff] %v807_v18   ;;  %v802_v23 = vpack.c.bf16 %v423_v21, %v420_v14  ;;  %v518_v24 = vadd.f32 %v423_v21, %v420_v14  ;;  %v533_v25 = vmul.f32 %v423_v21, %v423_v21  ;;  %821 = vst [vmem:[%s249_s22 + $0x18] sm:$0xff] %v817_v19  }
 0x12b   : > { %v812_v26 = vpack.c.bf16 %v439_v22, %v436_v15 }
 0x12c   : > { %803 = vst [vmem:[%s249_s22] sm:$0xff] %v802_v23   ;;  %v519_v28 = vadd.f32 %v852_v12, %v518_v24  ;;  %v540_v29 = vadd.f32 %v533_v25, %v532_v20 }
 0x12d   : > { %820 = vst [vmem:[%s249_s22 + $0x10] sm:$0xff] %v812_v26  }
 0x12e   : > { %1040 = shalt.err (!%p1037_p2)
}
 0x12f   : > { %s1041_s14 = scalar_lea.hbm %s1353_s7, 512  ;;  %s1045_s30 = scalar_lea.hbm %s1474_s2, 1024 }
 0x130   : > { %p1042_p6 = scmp.ne.s32.totalorder %s1353_s7, %s1041_s14  ;;  %p1046_p11 = scmp.lt.s32.totalorder %s1353_s7, %s1474_s2 }
 0x131   : > { %p1047_p1 = scmp.lt.s32.totalorder %s1045_s30, %s1041_s14 }
 0x132   : > { %p1043_p9 = pnand %p1042_p6, %p1291_p0 }
 0x133   : > { %p1048_p8 = por %p1047_p1, %p1046_p11 }
 0x134   : > { %p1044_p13 = pneg %p1043_p9 }
 0x136   : > { %p1049_p4 = pnand %p1048_p8, %p1044_p13 }
 0x138   : > { %1052 = shalt.err (!%p1049_p4)
}
 0x139   : > { %s1174_s5 = smov 64   ;;  %s1175_s6 = smov 4   ;;  %v535_v30 = vmul.f32 %v853_v16, %v853_v16  ;;  %v541_v31 = vadd.f32 %v540_v29, %v534_v27  ;;  %v520_v32 = vadd.f32 %v853_v16, %v519_v28  ;;  %v536_v33 = vmul.f32 %v436_v15, %v436_v15 }
 0x13a   : > { %880 = dma.vmem_to_hbm [thread:$0]  (%p1291_p0), %s1347_s23, 512, %s1353_s7, %s555_s8, %s1174_s5, %s1174_s5, %s1175_s6   ;;  %v537_v37 = vmul.f32 %v439_v22, %v439_v22  ;;  %v538_v39 = vmul.f32 %v1342_v13, %v1342_v13  ;;  %v539_v42 = vmul.f32 %v857_v17, %v857_v17 }
 0x13b   : > { %v521_v34 = vadd.f32 %v520_v32, %v436_v15  ;;  %v542_v35 = vadd.f32 %v541_v31, %v535_v30  ;;  %s559_s23 = sand.u32 1, %s1234_s21   ;;  %s785_s7 = sshll.u32 %s1159_s18, 4 }
 0x13c   : > { %s255_s8 = scalar_lea.vmem [#allocation9], %s1322_s13  ;;  %s261_s9 = scalar_lea.vmem [#allocation11], %s1322_s13 }
 0x13d   : > { %v522_v36 = vadd.f32 %v521_v34, %v439_v22  ;;  %v543_v38 = vadd.f32 %v542_v35, %v536_v33  ;;  %s592_s12 = sshll.u32 %s255_s8, 4  ;;  %s605_s27 = sshll.u32 %s261_s9, 4  ;;  %s1392_s12 = int_to_ptr.vmem [resolvable:$true] %s592_s12  ;;  %s1399_s27 = int_to_ptr.vmem [resolvable:$true] %s605_s27 }
 0x13e   : > { %s1390_s1 = scalar_lea.hbm %s1475_s3, %s785_s7  ;;  %s1397_s28 = scalar_lea.hbm %s1476_s4, %s785_s7 }
 0x13f   : > { %v523_v40 = vadd.f32 %v1342_v13, %v522_v36  ;;  %v544_v41 = vadd.f32 %v543_v38, %v537_v37  ;;  %s1401_s30 = scalar_lea.sflag [#allocation10], %s559_s23  ;;  %s1053_s22 = scalar_lea.vmem %s1392_s12, 16 }
 0x140   : > { %p1054_p10 = scmp.ne.s32.totalorder %s1392_s12, %s1053_s22  ;;  %s1176_s25 = smov [#allocation9]  }
 0x141   : > { %v524_v43 = vadd.f32 %v857_v17, %v523_v40  ;;  %v545_v44 = vadd.f32 %v544_v41, %v538_v39  ;;  %s1057_s5 = sshll.u32 %s1176_s25, 4  ;;  %s1058_s5 = int_to_ptr.vmem [resolvable:$false] %s1057_s5 }
 0x142   : > { %p1055_p12 = pnand %p1054_p10, %p1291_p0  ;;  %s1059_s6 = scalar_lea.vmem %s1058_s5, 32 }
 0x143   : > { %v525_v45 = vrot.slane %v524_v43, 4  ;;  %v546_v46 = vadd.f32 %v545_v44, %v539_v42  ;;  %p1060_p5 = scmp.lt.s32.totalorder %s1392_s12, %s1058_s5  ;;  %p1061_p7 = scmp.lt.s32.totalorder %s1059_s6, %s1053_s22 }
 0x144   : > { %p1056_p3 = pneg %p1055_p12 }
 0x145   : > { %v526_v47 = vadd.f32 %v525_v45, %v524_v43  ;;  %v547_v48 = vrot.slane %v546_v46, 4  ;;  %p1062_p2 = por %p1061_p7, %p1060_p5 }
 0x147   : > { %v527_v49 = vrot.slane %v526_v47, 2  ;;  %v548_v50 = vadd.f32 %v547_v48, %v546_v46  ;;  %p1063_p6 = pnand %p1062_p2, %p1056_p3 }
 0x149   : > { %v528_v51 = vadd.f32 %v527_v49, %v526_v47  ;;  %v549_v52 = vrot.slane %v548_v50, 2 }
 0x14b   : > { %v529_v53 = vrot.slane %v528_v51, 1  ;;  %v550_v54 = vadd.f32 %v549_v52, %v548_v50 }
 0x14d   : > { %v551_v55 = vrot.slane %v550_v54, 1  ;;  %v530_v56 = vadd.f32 %v529_v53, %v528_v51 }
 0x14f   : > { %531 = vst [vmem:[%s255_s8] sm:$0x1] %v530_v56  ;;  %v552_v57 = vadd.f32 %v551_v55, %v550_v54 }
 0x150   : > { %1066 = shalt.err (!%p1063_p6)
}
 0x151   : > { %s1067_s23 = scalar_lea.hbm %s1390_s1, 16  ;;  %s1071_s10 = scalar_lea.hbm %s1475_s3, 32 }
 0x152   : > { %p1068_p9 = scmp.ne.s32.totalorder %s1390_s1, %s1067_s23  ;;  %p1072_p1 = scmp.lt.s32.totalorder %s1390_s1, %s1475_s3 }
 0x153   : > { %p1073_p8 = scmp.lt.s32.totalorder %s1071_s10, %s1067_s23 }
 0x154   : > { %p1069_p13 = pnand %p1068_p9, %p1291_p0 }
 0x155   : > { %p1074_p4 = por %p1073_p8, %p1072_p1 }
 0x156   : > { %p1070_p11 = pneg %p1069_p13 }
 0x158   : > { %p1075_p10 = pnand %p1074_p4, %p1070_p11 }
 0x15a   : > { %1078 = shalt.err (!%p1075_p10)
}
 0x15b   : > { %881 = dma.vmem_to_hbm [thread:$0]  (%p1291_p0), %s1392_s12, 16, %s1390_s1, %s1401_s30   ;;  %553 = vst [vmem:[%s261_s9] sm:$0x1] %v552_v57 }
 0x15c   : > { %s1079_s21 = scalar_lea.vmem %s1399_s27, 16  ;;  %s1177_s22 = smov [#allocation11]  }
 0x15d   : > { %p1080_p12 = scmp.ne.s32.totalorder %s1399_s27, %s1079_s21  ;;  %s1083_s25 = sshll.u32 %s1177_s22, 4  ;;  %s1084_s25 = int_to_ptr.vmem [resolvable:$false] %s1083_s25 }
 0x15e   : > { %s1085_s5 = scalar_lea.vmem %s1084_s25, 32  ;;  %p1086_p7 = scmp.lt.s32.totalorder %s1399_s27, %s1084_s25 }
 0x15f   : > { %p1081_p3 = pnand %p1080_p12, %p1291_p0  ;;  %p1087_p2 = scmp.lt.s32.totalorder %s1085_s5, %s1079_s21 }
 0x161   : > { %p1082_p5 = pneg %p1081_p3  ;;  %p1088_p6 = por %p1087_p2, %p1086_p7 }
 0x163   : > { %p1089_p9 = pnand %p1088_p6, %p1082_p5 }
 0x165   : > { %1092 = shalt.err (!%p1089_p9)
}
 0x166   : > { %s1093_s13 = scalar_lea.hbm %s1397_s28, 16  ;;  %s1097_s1 = scalar_lea.hbm %s1476_s4, 32 }
 0x167   : > { %p1094_p13 = scmp.ne.s32.totalorder %s1397_s28, %s1093_s13  ;;  %p1098_p8 = scmp.lt.s32.totalorder %s1397_s28, %s1476_s4 }
 0x168   : > { %p1099_p4 = scmp.lt.s32.totalorder %s1097_s1, %s1093_s13 }
 0x169   : > { %p1095_p11 = pnand %p1094_p13, %p1291_p0 }
 0x16a   : > { %p1100_p10 = por %p1099_p4, %p1098_p8 }
 0x16b   : > { %p1096_p1 = pneg %p1095_p11 }
 0x16d   : > { %p1101_p12 = pnand %p1100_p10, %p1096_p1 }
 0x16f   : > { %1104 = shalt.err (!%p1101_p12)
}
 0x170   : > { %882 = dma.vmem_to_hbm [thread:$0]  (%p1291_p0), %s1399_s27, 16, %s1397_s28, %s1401_s30  }
 0x171 PF: > { %s617_s7 = sand.u32 1, %s1147_s15   ;;  %p1495_p3 = scmp.ne.s32.totalorder %s1483_s24, 0 }
 0x172   : > { %p1496_p5 = scmp.ge.s32.totalorder %s1167_s20, 2  ;;  %s618_s8 = scalar_lea.sflag [#allocation5], %s617_s7 }
 0x174   : > { %p895_p7 = pnand %p1496_p5, %p1495_p3 }
 0x176   : > { %p896_p2 = pneg %p895_p7 }
 0x178   : > { %1138 = dma.done.wait (%p896_p2), %s618_s8, 512  }
 0x179   : > { %1140 = vsyncadd (%p896_p2), %s618_s8, 4294966784  ;;  %s1497_s10 = sadd.s32 4294967294, %s1167_s20  }
 0x17a   : > { %s626_s14 = sand.u32 1, %s1497_s10  }
 0x17b   : > { %s627_s11 = scalar_lea.sflag [#allocation10], %s626_s14 }
 0x17c   : > { %1142 = dma.done.wait (%p896_p2), %s627_s11, 32  }
 0x17d   : > { %1144 = vsyncadd (%p896_p2), %s627_s11, 4294967264  ;;  %s25_s20 = sadd.s32 1, %s1167_s20   ;;  %s1498_s15 = smov %s1151_s16 }
 0x17e   : > { %p22_p0 = scmp.ge.s32.totalorder %s25_s20, 4   ;;  %s1499_s16 = smov %s1155_s17 }
 0x17f   : > { %s1500_s17 = smov %s1300_s26  ;;  %s1501_s18 = smov %s1163_s19 }
 0x180   : > { %s1502_s19 = smov %s1504_s29  ;;  %24 = sbr.rel (!%p22_p0) target bundleno = 11 (0xb), region = 118 }
 0x185   :  { %639 = vsyncpa [#allocation4], 1 }
 0x186   :  { %641 = vsyncpa [#allocation4 + $0x1], 1 }
 0x187   :  { %642 = vsyncpa [#allocation7], 1 }
 0x188   :  { %643 = vsyncpa [#allocation5], 1 }
 0x189   :  { %645 = vsyncpa [#allocation5 + $0x1], 1 }
 0x18a   :  { %646 = vsyncpa [#allocation10], 1 }
 0x18b   :  { %648 = vsyncpa [#allocation10 + $0x1], 1 }

</bundles_post_ra>
